<compile_context>
chip_gen: v7x
topology: tpu7x:2x2x1
jax: 0.10.0
libtpu: 0.0.40
codegen_flags: <defaults>
</compile_context>

<pallas_src>
import jax
import jax.numpy as jnp
from jax import lax
from jax.experimental import pallas as pl
from jax.experimental.pallas import tpu as pltpu


def _round_up(x, m):
    return ((x + m - 1) // m) * m


def _physical_vmem_bytes():
    try:
        return int(pltpu.get_tpu_info().vmem_capacity_bytes)
    except Exception:
        return 64 << 20  # conservative fallback: v7x per-TensorCore VMEM


def _make_attention_kernel(T, in_dtype):
    # v6e/v7x have bf16 VPU lanes: keep the per-timestep multiply in bf16 and
    # upcast only the (b_tile, D) product into the f32 accumulator.  On v5e
    # the compiler widens bf16 VALU ops, so this stays correct everywhere.
    mul_in_input_dtype = (in_dtype == jnp.bfloat16)
    unroll = True if T <= 32 else 8

    def kernel(s_ref, x_ref, o_ref):
        # s_ref: (T,)           f32 softmax scores, resident in SMEM
        # x_ref: (b_tile, T, D) batch chunk in VMEM
        # o_ref: (b_tile, D)    weighted time-sum for that chunk
        bt, _, D = x_ref.shape

        def body(t, acc):
            s_t = s_ref[t]                       # scalar softmax weight (SMEM)
            xt = x_ref[:, t, :]                  # (bt, D) single-timestep slice
            if mul_in_input_dtype:
                prod = (xt * s_t.astype(xt.dtype)).astype(jnp.float32)
            else:
                prod = xt.astype(jnp.float32) * s_t
            return acc + prod                    # f32 accumulate (VPU only)

        acc = lax.fori_loop(0, T, body, jnp.zeros((bt, D), jnp.float32),
                            unroll=unroll)
        o_ref[...] = acc.astype(o_ref.dtype)

    return kernel


def attention_forward(x, weights, *, b_tile=None, vmem_budget_bytes=None):
    """x: (B, T, D), weights: (T,) -> (B, D) in x.dtype.

    out[b, d] = sum_t x[b, t, d] * softmax(weights)[t]
    """
    B, T, D = x.shape
    itemsize = x.dtype.itemsize

    # Softmax over the T logits: tiny O(T) op, computed exactly once in the
    # wrapper and shipped to SMEM as a (T,) array of scalars.
    scores = jax.nn.softmax(weights.astype(jnp.float32))

    # ---- padded per-batch-row VMEM footprint -------------------------------
    # VMEM stores the last two dims of a block in native (sub, 128) tiles
    # (f32 (8,128), bf16 (16,128), int8 (32,128)); raw-byte sizing can be
    # 4-8x too small when D < 128 or T < the dtype's sublane minimum.
    sub = {4: 8, 2: 16, 1: 32}.get(itemsize, 8)
    lane_d = _round_up(D, 128)
    in_row = _round_up(T, sub) * lane_d * itemsize       # input block / row
    out_row = lane_d * itemsize                          # output block / row
    acc_row = lane_d * 4                                 # f32 accumulator / row
    # double-buffered input + double-buffered output + live accumulator
    per_row = 2 * in_row + 2 * out_row + acc_row

    phys = _physical_vmem_bytes()
    if vmem_budget_bytes is None:
        # v5e/v6e (128 MiB VMEM): 96 MiB.  v7x (64 MiB): 48 MiB (16 MiB headroom).
        vmem_budget_bytes = (96 << 20) if phys >= (128 << 20) else max(
            phys - (16 << 20), 16 << 20)
    budget = min(int(vmem_budget_bytes), max(phys - (8 << 20), 8 << 20))

    if b_tile is None:
        cap = max(1, int(0.85 * budget) // per_row)
        if B >= 16:
            # Guarantee >= 2 "parallel" grid steps so both v7x TensorCores get
            # work on this bandwidth-bound kernel.
            b_tile = min(cap, pl.cdiv(B, 2))
            if b_tile >= 8:
                b_tile = (b_tile // 8) * 8       # output sublane alignment
            else:
                # Extremely large padded T*D per row: 8 is the smallest legal
                # partial tile (output block's second-to-last dim must be a
                # multiple of 8 or equal B); the VMEM limit below grows to it.
                b_tile = min(B, 8)
        else:
            b_tile = min(B, cap)
            if b_tile < B:
                b_tile = min(B, max(8, (b_tile // 8) * 8))
        b_tile = max(1, b_tile)

    grid = (pl.cdiv(B, b_tile),)

    # Compiler VMEM limit derived from the actual footprint (never below the
    # chosen blocks, never above physical VMEM).
    footprint = b_tile * per_row + (1 << 20)     # +1 MiB slack (scores, temps)
    vmem_limit = int(min(max(budget, footprint), phys))

    kernel = _make_attention_kernel(T, x.dtype)

    # NOTE: when B % b_tile != 0 the final partial block computes on padded
    # garbage rows; the store is masked so valid output rows are unaffected.
    out = pl.pallas_call(
        kernel,
        out_shape=jax.ShapeDtypeStruct((B, D), x.dtype),
        grid_spec=pltpu.PrefetchScalarGridSpec(
            num_scalar_prefetch=0,
            grid=grid,
            in_specs=[
                # Softmax scores: whole (T,) array resident in SMEM.
                pl.BlockSpec(memory_space=pltpu.MemorySpace.SMEM),
                # One large batch chunk per step; (T, D) equal the full dims.
                pl.BlockSpec((b_tile, T, D), lambda b: (b, 0, 0)),
            ],
            out_specs=pl.BlockSpec((b_tile, D), lambda b: (b, 0)),
        ),
        compiler_params=pltpu.CompilerParams(
            dimension_semantics=("parallel",),
            vmem_limit_bytes=vmem_limit,
        ),
    )(scores, x)
    return out


def attention_reference(x, weights):
    scores = jax.nn.softmax(weights.astype(jnp.float32))
    return jnp.einsum("btd,t->bd", x.astype(jnp.float32), scores)


if __name__ == "__main__":
    B, T, D = 2, 8, 32  # batch, max_seq_len (params.max_seq_len), lstm dim

    key = jax.random.PRNGKey(0)
    k_x, k_w = jax.random.split(key)
    x = jax.random.normal(k_x, (B, T, D), dtype=jnp.float32)
    # nn.init.normal_(self.weights): standard normal, deterministic here.
    weights = jax.random.normal(k_w, (T,), dtype=jnp.float32)

    # f32 path
    out = jax.block_until_ready(attention_forward(x, weights))
    ref = attention_reference(x, weights)
    assert out.shape == (B, D)
    assert jnp.allclose(out, ref, rtol=1e-5, atol=1e-5), "f32 mismatch vs reference"

    # bf16-input path (halves HBM bytes; kernel accumulates in f32)
    x_bf16 = x.astype(jnp.bfloat16)
    out_bf = jax.block_until_ready(attention_forward(x_bf16, weights))
    ref_bf = attention_reference(x_bf16.astype(jnp.float32), weights)
    assert out_bf.shape == (B, D)
    assert jnp.allclose(out_bf.astype(jnp.float32), ref_bf, rtol=5e-2, atol=5e-2), \
        "bf16 mismatch vs reference"

    # Larger shape exercising the multi-step "parallel" grid path (B >= 16).
    B2, T2, D2 = 48, 16, 256
    x2 = jax.random.normal(jax.random.PRNGKey(1), (B2, T2, D2), dtype=jnp.float32)
    w2 = jax.random.normal(jax.random.PRNGKey(2), (T2,), dtype=jnp.float32)
    out2 = jax.block_until_ready(attention_forward(x2, w2))
    ref2 = attention_reference(x2, w2)
    assert jnp.allclose(out2, ref2, rtol=1e-5, atol=1e-5), "multi-step mismatch"

    print("KERNEL_OK")
</pallas_src>

<mosaic_0001>
module attributes {stable_mosaic.version = 11 : i64} {
  func.func @kernel(%arg0: i32, %arg1: memref<8xf32, #tpu.memory_space<smem>>, %arg2: memref<2x8x32xf32, #tpu.memory_space<vmem>>, %arg3: memref<2x32xf32, #tpu.memory_space<vmem>>) attributes {dimension_semantics = [#tpu.dimension_semantics<parallel>], iteration_bounds = array<i64: 1>, scalar_prefetch = 0 : i64, scratch_operands = 0 : i64, tpu.core_type = #tpu.core_type<tc>, window_params = [{transform_indices = @transform_0, window_bounds = array<i64: 8>}, {transform_indices = @transform_1, window_bounds = array<i64: 2, 8, 32>}, {transform_indices = @transform_2, window_bounds = array<i64: 2, 32>}]} {
    %cst = arith.constant 0.000000e+00 : f32
    %0 = vector.broadcast %cst : f32 to vector<2x32xf32>
    %c0_i32 = arith.constant 0 : i32
    %1 = arith.index_cast %c0_i32 : i32 to index
    %2 = memref.load %arg1[%1] : memref<8xf32, #tpu.memory_space<smem>>
    %c0 = arith.constant 0 : index
    %3 = arith.index_cast %c0_i32 : i32 to index
    %c0_0 = arith.constant 0 : index
    %4 = vector.load %arg2[%c0, %3, %c0_0] : memref<2x8x32xf32, #tpu.memory_space<vmem>>, vector<2x1x32xf32>
    %5 = vector.shape_cast %4 : vector<2x1x32xf32> to vector<2x32xf32>
    %6 = vector.broadcast %2 : f32 to vector<2x32xf32>
    %7 = arith.mulf %5, %6 : vector<2x32xf32>
    %8 = arith.addf %0, %7 : vector<2x32xf32>
    %c1_i32 = arith.constant 1 : i32
    %9 = arith.index_cast %c1_i32 : i32 to index
    %10 = memref.load %arg1[%9] : memref<8xf32, #tpu.memory_space<smem>>
    %c0_1 = arith.constant 0 : index
    %11 = arith.index_cast %c1_i32 : i32 to index
    %c0_2 = arith.constant 0 : index
    %12 = vector.load %arg2[%c0_1, %11, %c0_2] : memref<2x8x32xf32, #tpu.memory_space<vmem>>, vector<2x1x32xf32>
    %13 = vector.shape_cast %12 : vector<2x1x32xf32> to vector<2x32xf32>
    %14 = vector.broadcast %10 : f32 to vector<2x32xf32>
    %15 = arith.mulf %13, %14 : vector<2x32xf32>
    %16 = arith.addf %8, %15 : vector<2x32xf32>
    %c2_i32 = arith.constant 2 : i32
    %17 = arith.index_cast %c2_i32 : i32 to index
    %18 = memref.load %arg1[%17] : memref<8xf32, #tpu.memory_space<smem>>
    %c0_3 = arith.constant 0 : index
    %19 = arith.index_cast %c2_i32 : i32 to index
    %c0_4 = arith.constant 0 : index
    %20 = vector.load %arg2[%c0_3, %19, %c0_4] : memref<2x8x32xf32, #tpu.memory_space<vmem>>, vector<2x1x32xf32>
    %21 = vector.shape_cast %20 : vector<2x1x32xf32> to vector<2x32xf32>
    %22 = vector.broadcast %18 : f32 to vector<2x32xf32>
    %23 = arith.mulf %21, %22 : vector<2x32xf32>
    %24 = arith.addf %16, %23 : vector<2x32xf32>
    %c3_i32 = arith.constant 3 : i32
    %25 = arith.index_cast %c3_i32 : i32 to index
    %26 = memref.load %arg1[%25] : memref<8xf32, #tpu.memory_space<smem>>
    %c0_5 = arith.constant 0 : index
    %27 = arith.index_cast %c3_i32 : i32 to index
    %c0_6 = arith.constant 0 : index
    %28 = vector.load %arg2[%c0_5, %27, %c0_6] : memref<2x8x32xf32, #tpu.memory_space<vmem>>, vector<2x1x32xf32>
    %29 = vector.shape_cast %28 : vector<2x1x32xf32> to vector<2x32xf32>
    %30 = vector.broadcast %26 : f32 to vector<2x32xf32>
    %31 = arith.mulf %29, %30 : vector<2x32xf32>
    %32 = arith.addf %24, %31 : vector<2x32xf32>
    %c4_i32 = arith.constant 4 : i32
    %33 = arith.index_cast %c4_i32 : i32 to index
    %34 = memref.load %arg1[%33] : memref<8xf32, #tpu.memory_space<smem>>
    %c0_7 = arith.constant 0 : index
    %35 = arith.index_cast %c4_i32 : i32 to index
    %c0_8 = arith.constant 0 : index
    %36 = vector.load %arg2[%c0_7, %35, %c0_8] : memref<2x8x32xf32, #tpu.memory_space<vmem>>, vector<2x1x32xf32>
    %37 = vector.shape_cast %36 : vector<2x1x32xf32> to vector<2x32xf32>
    %38 = vector.broadcast %34 : f32 to vector<2x32xf32>
    %39 = arith.mulf %37, %38 : vector<2x32xf32>
    %40 = arith.addf %32, %39 : vector<2x32xf32>
    %c5_i32 = arith.constant 5 : i32
    %41 = arith.index_cast %c5_i32 : i32 to index
    %42 = memref.load %arg1[%41] : memref<8xf32, #tpu.memory_space<smem>>
    %c0_9 = arith.constant 0 : index
    %43 = arith.index_cast %c5_i32 : i32 to index
    %c0_10 = arith.constant 0 : index
    %44 = vector.load %arg2[%c0_9, %43, %c0_10] : memref<2x8x32xf32, #tpu.memory_space<vmem>>, vector<2x1x32xf32>
    %45 = vector.shape_cast %44 : vector<2x1x32xf32> to vector<2x32xf32>
    %46 = vector.broadcast %42 : f32 to vector<2x32xf32>
    %47 = arith.mulf %45, %46 : vector<2x32xf32>
    %48 = arith.addf %40, %47 : vector<2x32xf32>
    %c6_i32 = arith.constant 6 : i32
    %49 = arith.index_cast %c6_i32 : i32 to index
    %50 = memref.load %arg1[%49] : memref<8xf32, #tpu.memory_space<smem>>
    %c0_11 = arith.constant 0 : index
    %51 = arith.index_cast %c6_i32 : i32 to index
    %c0_12 = arith.constant 0 : index
    %52 = vector.load %arg2[%c0_11, %51, %c0_12] : memref<2x8x32xf32, #tpu.memory_space<vmem>>, vector<2x1x32xf32>
    %53 = vector.shape_cast %52 : vector<2x1x32xf32> to vector<2x32xf32>
    %54 = vector.broadcast %50 : f32 to vector<2x32xf32>
    %55 = arith.mulf %53, %54 : vector<2x32xf32>
    %56 = arith.addf %48, %55 : vector<2x32xf32>
    %c7_i32 = arith.constant 7 : i32
    %57 = arith.index_cast %c7_i32 : i32 to index
    %58 = memref.load %arg1[%57] : memref<8xf32, #tpu.memory_space<smem>>
    %c0_13 = arith.constant 0 : index
    %59 = arith.index_cast %c7_i32 : i32 to index
    %c0_14 = arith.constant 0 : index
    %60 = vector.load %arg2[%c0_13, %59, %c0_14] : memref<2x8x32xf32, #tpu.memory_space<vmem>>, vector<2x1x32xf32>
    %61 = vector.shape_cast %60 : vector<2x1x32xf32> to vector<2x32xf32>
    %62 = vector.broadcast %58 : f32 to vector<2x32xf32>
    %63 = arith.mulf %61, %62 : vector<2x32xf32>
    %64 = arith.addf %56, %63 : vector<2x32xf32>
    %c8_i32 = arith.constant 8 : i32
    %c0_15 = arith.constant 0 : index
    %c0_16 = arith.constant 0 : index
    %65 = vector.load %arg3[%c0_15, %c0_16] : memref<2x32xf32, #tpu.memory_space<vmem>>, vector<2x32xf32>
    tpu.vector_store %arg3[%c0_15, %c0_16], %64 {strides = array<i32>} : memref<2x32xf32, #tpu.memory_space<vmem>>, vector<2x32xf32>,
    return
  }
  func.func @transform_0(%arg0: i32) -> i32 {
    %c0_i32 = arith.constant 0 : i32
    %c0_i32_0 = arith.constant 0 : i32
    return %c0_i32 : i32
  }
  func.func @transform_1(%arg0: i32) -> (i32, i32, i32) {
    %c0_i32 = arith.constant 0 : i32
    %c0_i32_0 = arith.constant 0 : i32
    %c0_i32_1 = arith.constant 0 : i32
    return %arg0, %c0_i32, %c0_i32_0 : i32, i32, i32
  }
  func.func @transform_2(%arg0: i32) -> (i32, i32) {
    %c0_i32 = arith.constant 0 : i32
    %c0_i32_0 = arith.constant 0 : i32
    return %arg0, %c0_i32 : i32, i32
  }
}

</mosaic_0001>

<bundles_post_ra>
// kernel: tpu_custom_call.1
= control target key start
LH: loop header
LB: loop body
LE: loop exit
PB: predicated region body
PF: predicated region fallthrough
CT: control target
= control target key end

     0   :  { %7 = vsyncpa [#allocation5], 0  ;;  %s265_s0 = inlined_call_operand.hbm [shape: f32[8], index: 0, kind: input, shape index: {}]   ;;  %s266_s1 = inlined_call_operand.hbm [shape: f32[2,8,32], index: 1, kind: input, shape index: {}]   ;;  %s267_s2 = inlined_call_operand.hbm [shape: f32[2,32], index: 2, kind: output, shape index: {}]  }
   0x1   :  { %8 = vsyncpa [#allocation3], 0 }
   0x2   :  { %9 = vsyncpa [#allocation4], 0  ;;  %s137_s11 = scalar_lea.hbm %s265_s0, 16 }
   0x3   :  { %p138_p0 = scmp.ne.s32.totalorder %s265_s0, %s137_s11  ;;  %p141_p1 = scmp.lt.u32.totalorder %s137_s11, %s265_s0 }
   0x5   :  { %p143_p2 = pnand %p141_p1, %p138_p0 }
   0x7   :  { %146 = shalt.err (!%p143_p2)
}
   0x8   :  { %s197_s16 = smov [#allocation2]   ;;  %s198_s19 = smov [#allocation6]  }
   0x9   :  { %17 = dma.hbm_to_smem %s265_s0, 16, %s197_s16, [#allocation5]  }
   0xa   :  { %s23_s20 = sshll.u32 %s198_s19, 4  ;;  %s147_s23 = scalar_lea.hbm %s266_s1, 256  ;;  %s24_s20 = int_to_ptr.vmem [resolvable:$true] %s23_s20 }
   0xb   :  { %p148_p3 = scmp.ne.s32.totalorder %s266_s1, %s147_s23  ;;  %p151_p4 = scmp.lt.u32.totalorder %s147_s23, %s266_s1 }
   0xd   :  { %p153_p5 = pnand %p151_p4, %p148_p3 }
   0xf   :  { %156 = shalt.err (!%p153_p5)
}
  0x10   :  { %s157_s28 = scalar_lea.vmem %s24_s20, 256  ;;  %p162_p7 = scmp.lt.s32.totalorder %s24_s20, %s24_s20 }
  0x11   :  { %p158_p6 = scmp.ne.s32.totalorder %s24_s20, %s157_s28  ;;  %p163_p8 = scmp.lt.s32.totalorder %s157_s28, %s157_s28 }
  0x13   :  { %p164_p9 = por %p163_p8, %p162_p7 }
  0x15   :  { %p165_p10 = pnand %p164_p9, %p158_p6 }
  0x17   :  { %168 = shalt.err (!%p165_p10)
}
  0x18   :  { %s199_s0 = smov 128   ;;  %s200_s29 = smov 8  }
  0x19   :  { %29 = dma.hbm_to_vmem [thread:$0]  %s266_s1, 256, %s24_s20, [#allocation3], %s199_s0, %s199_s0, %s200_s29  }
  0x1a   :  { %191 = dma.done.wait [#allocation5], 16  }
  0x1b   :  { %192 = vsyncadd [#allocation5], 4294967280 }
  0x1c   :  { %193 = dma.done.wait [#allocation3], 256  }
  0x1d   :  { %194 = vsyncadd [#allocation3], 4294967040 }
  0x1e   :  { %36 = sfence }
  0x1f   :  { %s37_s4 = sld [smem:[#allocation2]]  ;;  %s125_s5 = sld [smem:[#allocation2 + $0x1]]  ;;  %v38_v0 = vld [vmem:[#allocation6] sm:$0x1]  ;;  %v39_v1 = vld [vmem:[#allocation6 + $0x8] sm:$0x1] }
  0x20   :  { %s126_s6 = sld [smem:[#allocation2 + $0x2]]  ;;  %s127_s7 = sld [smem:[#allocation2 + $0x3]]  ;;  %v46_v2 = vld [vmem:[#allocation6 + $0x1] sm:$0x1]  ;;  %v47_v3 = vld [vmem:[#allocation6 + $0x9] sm:$0x1] }
  0x21   :  { %s241_s8 = sld [smem:[#allocation2 + $0x4]]  ;;  %s243_s9 = sld [smem:[#allocation2 + $0x5]]  ;;  %v54_v5 = vld [vmem:[#allocation6 + $0x2] sm:$0x1]  ;;  %v55_v6 = vld [vmem:[#allocation6 + $0xa] sm:$0x1] }
  0x22   :  { %s245_s1 = sld [smem:[#allocation2 + $0x6]]  ;;  %v62_v10 = vld [vmem:[#allocation6 + $0x3] sm:$0x1]  ;;  %v63_v11 = vld [vmem:[#allocation6 + $0xb] sm:$0x1]  ;;  %s247_s10 = sld [smem:[#allocation2 + $0x7]] }
  0x23   :  { %v70_v18 = vld [vmem:[#allocation6 + $0x4] sm:$0x1]  ;;  %v71_v19 = vld [vmem:[#allocation6 + $0xc] sm:$0x1]  ;;  %v78_v25 = vld [vmem:[#allocation6 + $0x5] sm:$0x1] }
  0x24   :  { %v79_v26 = vld [vmem:[#allocation6 + $0xd] sm:$0x1]  ;;  %v86_v32 = vld [vmem:[#allocation6 + $0x6] sm:$0x1]  ;;  %v87_v33 = vld [vmem:[#allocation6 + $0xe] sm:$0x1] }
  0x25   :  { %v40_v4 = vstv %s37_s4  ;;  %v48_v9 = vstv %s125_s5  ;;  %v94_v39 = vld [vmem:[#allocation6 + $0x7] sm:$0x1]  ;;  %v95_v40 = vld [vmem:[#allocation6 + $0xf] sm:$0x1]  ;;  %s201_s11 = smov [#allocation7]   ;;  %vm104_vm0 = vcmask 1041409  }
  0x26   :  { %v41_v7 = vmul.f32 %v40_v4, %v38_v0  ;;  %v42_v8 = vmul.f32 %v40_v4, %v39_v1  ;;  %v49_v12 = vmul.f32 %v48_v9, %v46_v2  ;;  %v50_v13 = vmul.f32 %v48_v9, %v47_v3  ;;  %s115_s12 = sshll.u32 %s201_s11, 4  ;;  %s116_s12 = int_to_ptr.vmem [resolvable:$true] %s115_s12 }
  0x27   :  { %v56_v14 = vstv %s126_s6  ;;  %v64_v17 = vstv %s127_s7  ;;  %v72_v24 = vstv %s241_s8  ;;  %v80_v27 = vstv %s243_s9  ;;  %s169_s13 = scalar_lea.vmem %s116_s12, 32  ;;  %p174_p12 = scmp.lt.s32.totalorder %s116_s12, %s116_s12 }
  0x28   :  { %v57_v15 = vmul.f32 %v56_v14, %v54_v5  ;;  %v58_v16 = vmul.f32 %v56_v14, %v55_v6  ;;  %v51_v20 = vadd.f32 %v49_v12, %v41_v7  ;;  %v52_v21 = vadd.f32 %v50_v13, %v42_v8  ;;  %p170_p11 = scmp.ne.s32.totalorder %s116_s12, %s169_s13  ;;  %p175_p13 = scmp.lt.s32.totalorder %s169_s13, %s169_s13 }
  0x29   :  { %v65_v22 = vmul.f32 %v64_v17, %v62_v10  ;;  %v66_v23 = vmul.f32 %v64_v17, %v63_v11  ;;  %v73_v30 = vmul.f32 %v72_v24, %v70_v18  ;;  %v74_v31 = vmul.f32 %v72_v24, %v71_v19 }
  0x2a   :  { %v59_v28 = vadd.f32 %v57_v15, %v51_v20  ;;  %v60_v29 = vadd.f32 %v58_v16, %v52_v21  ;;  %v88_v34 = vstv %s245_s1  ;;  %v81_v37 = vmul.f32 %v80_v27, %v78_v25  ;;  %p176_p0 = por %p175_p13, %p174_p12 }
  0x2b   :  { %v82_v38 = vmul.f32 %v80_v27, %v79_v26  ;;  %v96_v41 = vstv %s247_s10  ;;  %v89_v44 = vmul.f32 %v88_v34, %v86_v32  ;;  %v90_v45 = vmul.f32 %v88_v34, %v87_v33 }
  0x2c   :  { %v67_v35 = vadd.f32 %v65_v22, %v59_v28  ;;  %v68_v36 = vadd.f32 %v66_v23, %v60_v29  ;;  %v97_v48 = vmul.f32 %v96_v41, %v94_v39  ;;  %v98_v49 = vmul.f32 %v96_v41, %v95_v40  ;;  %p177_p1 = pnand %p176_p0, %p170_p11 }
  0x2d   :  { %vm107_vm1 = vcmask 254976  }
  0x2e   :  { %v75_v42 = vadd.f32 %v73_v30, %v67_v35  ;;  %v76_v43 = vadd.f32 %v74_v31, %v68_v36 }
  0x30   :  { %v83_v46 = vadd.f32 %v81_v37, %v75_v42  ;;  %v84_v47 = vadd.f32 %v82_v38, %v76_v43 }
  0x32   :  { %v91_v50 = vadd.f32 %v89_v44, %v83_v46  ;;  %v92_v51 = vadd.f32 %v90_v45, %v84_v47 }
  0x34   :  { %v99_v52 = vadd.f32 %v97_v48, %v91_v50  ;;  %v100_v53 = vadd.f32 %v98_v49, %v92_v51 }
  0x36   :  { %v103_v54 = vrot.slane %v100_v53, 7 }
  0x38   :  { %v105_v55 = vsel %vm104_vm0, %v103_v54, %v99_v52 }
  0x39   :  { %108 = vst.msk [vmem:[#allocation7] sm:$0x3] %vm107_vm1, %v105_v55 }
  0x3a   :  { %180 = shalt.err (!%p177_p1)
}
  0x3b   :  { %s181_s16 = scalar_lea.hbm %s267_s2, 32 }
  0x3c   :  { %p182_p2 = scmp.ne.s32.totalorder %s267_s2, %s181_s16  ;;  %p185_p3 = scmp.lt.u32.totalorder %s181_s16, %s267_s2 }
  0x3e   :  { %p187_p4 = pnand %p185_p3, %p182_p2 }
  0x40   :  { %190 = shalt.err (!%p187_p4)
}
  0x41   :  { %118 = dma.vmem_to_hbm [thread:$0]  %s116_s12, 32, %s267_s2, [#allocation4]  }
  0x42   :  { %195 = dma.done.wait [#allocation4], 32  }
  0x43   :  { %196 = vsyncadd [#allocation4], 4294967264 }
  0x44   :  { %122 = vsyncpa [#allocation3], 1 }
  0x45   :  { %123 = vsyncpa [#allocation4], 1 }
  0x46   :  { %124 = vsyncpa [#allocation5], 1 }

</bundles_post_ra>
